<compile_context>
chip_gen: v7x
topology: tpu7x:2x2x1
jax: 0.10.0
libtpu: 0.0.40
codegen_flags: <defaults>
</compile_context>

<pallas_src>
import functools

import jax
import jax.numpy as jnp
from jax.experimental import pallas as pl
from jax.experimental.pallas import tpu as pltpu

LN_EPS = 1e-5          # PyTorch nn.LayerNorm default
H1, H2 = 32, 64        # hidden widths from the module
LANES = 128            # lane-dense padded width for all activations
MAX_TB = 1024          # batch tile rows for large-batch calls


def _round_up(n, m):
    return ((n + m - 1) // m) * m


def _layernorm_1pass(x, gamma, beta, inv_n):
    """LayerNorm with a single data pass (sum + sum of squares).

    Padded lanes of `x` are exactly zero and gamma/beta are zero there, so
    reducing over all 128 lanes while dividing by the true width is exact and
    the padded lanes stay zero on output.
    """
    s = jnp.sum(x, axis=-1, keepdims=True)
    s2 = jnp.sum(x * x, axis=-1, keepdims=True)
    mu = s * inv_n
    var = s2 * inv_n - mu * mu
    return (x - mu) * jax.lax.rsqrt(var + LN_EPS) * gamma + beta


def _actor_kernel(x_ref, w_ref, p_ref, out_ref, *, in_pad):
    """One batch tile of the Actor forward.

    x_ref   : (TB, in_pad)          bf16  state tile (zero-padded features)
    w_ref   : (in_pad+256, 128)     bf16  packed [w1 | w2 | w3] weight slab,
                                          each zero-padded to 128 lanes
    p_ref   : (8, 128)              f32   packed [b1,g1,be1,b2,g2,be2,b3] rows
    out_ref : (TB, 128)             f32   lane-dense padded actions
    """
    r2 = in_pad            # end of w1 rows (multiple of 16)
    r3 = in_pad + LANES    # end of w2 rows

    x = x_ref[...]         # (TB, in_pad) bf16

    # fc1 + LayerNorm(32).  Original `x - F.relu(x)` discards its result ->
    # no relu here (faithful reproduction of the module's bug).
    h1 = jnp.dot(x, w_ref[0:r2, :],
                 preferred_element_type=jnp.float32) + p_ref[0:1, :]
    h1 = _layernorm_1pass(h1, p_ref[1:2, :], p_ref[2:3, :], 1.0 / H1)

    # fc2 + LayerNorm(64) + relu
    h2 = jnp.dot(h1.astype(jnp.bfloat16), w_ref[r2:r3, :],
                 preferred_element_type=jnp.float32) + p_ref[3:4, :]
    h2 = _layernorm_1pass(h2, p_ref[4:5, :], p_ref[5:6, :], 1.0 / H2)
    h2 = jnp.maximum(h2, 0.0)

    # policy head (zero-padded action lanes) + tanh; lane-dense store.
    logits = jnp.dot(h2.astype(jnp.bfloat16), w_ref[r3:r3 + LANES, :],
                     preferred_element_type=jnp.float32) + p_ref[6:7, :]
    out_ref[...] = jnp.tanh(logits)


def pack_params(params):
    """Pack the 10 Actor parameters into 2 lane-dense slabs.

    Returns:
      w_slab : (in_pad + 256, 128) bf16 -- rows [0:in_pad]   = w1 (lanes 0:32)
                                           rows [in_pad:+128] = w2 (lanes 0:64)
                                           rows [in_pad+128:+128] = w3
               all unused rows/lanes are zero.
      p_slab : (8, 128) f32             -- rows b1,g1,be1,b2,g2,be2,b3,(unused)
    """
    (w1, b1, g1, be1, w2, b2, g2, be2, w3, b3) = params
    in_dim = w1.shape[0]
    n_actions = w3.shape[1]
    # 16-row alignment keeps bf16 sublane-packed slices of the slab aligned.
    in_pad = _round_up(in_dim, 16)

    w_slab = jnp.zeros((in_pad + 2 * LANES, LANES), jnp.float32)
    w_slab = w_slab.at[0:in_dim, 0:H1].set(w1)
    w_slab = w_slab.at[in_pad:in_pad + H1, 0:H2].set(w2)
    w_slab = w_slab.at[in_pad + LANES:in_pad + LANES + H2, 0:n_actions].set(w3)
    w_slab = w_slab.astype(jnp.bfloat16)

    p_slab = jnp.zeros((8, LANES), jnp.float32)
    p_slab = p_slab.at[0, 0:H1].set(b1.reshape(-1))
    p_slab = p_slab.at[1, 0:H1].set(g1.reshape(-1))
    p_slab = p_slab.at[2, 0:H1].set(be1.reshape(-1))
    p_slab = p_slab.at[3, 0:H2].set(b2.reshape(-1))
    p_slab = p_slab.at[4, 0:H2].set(g2.reshape(-1))
    p_slab = p_slab.at[5, 0:H2].set(be2.reshape(-1))
    p_slab = p_slab.at[6, 0:n_actions].set(b3.reshape(-1))
    return w_slab, p_slab


def actor_forward(x, w_slab, p_slab, n_actions):
    """x: (B, input_dim) f32 -> actions (B, n_actions) f32."""
    B, in_dim = x.shape
    in_pad = w_slab.shape[0] - 2 * LANES
    w_rows = w_slab.shape[0]

    # Batch tiling: whole (padded) batch in one tile when small, otherwise
    # MAX_TB-row tiles pipelined over a parallel grid.
    B_pad = _round_up(B, 8)
    if B_pad <= MAX_TB:
        tb = B_pad
    else:
        tb = MAX_TB
        B_pad = _round_up(B_pad, tb)
    grid = (B_pad // tb,)

    # Pad state to (B_pad, in_pad) and cast to bf16 (halves x bytes moved;
    # zero-padded features hit zero-padded weight rows -> no effect on result).
    x_p = jnp.pad(x, ((0, B_pad - B), (0, in_pad - in_dim))).astype(jnp.bfloat16)

    cost = pl.CostEstimate(
        flops=2 * B_pad * (in_pad * LANES + LANES * LANES + LANES * LANES),
        transcendentals=B_pad * (LANES + 2),          # tanh + 2 rsqrt per row
        bytes_accessed=(B_pad * in_pad * 2 + w_rows * LANES * 2
                        + 8 * LANES * 4 + B_pad * LANES * 4),
    )

    out_padded = pl.pallas_call(
        functools.partial(_actor_kernel, in_pad=in_pad),
        out_shape=jax.ShapeDtypeStruct((B_pad, LANES), jnp.float32),
        grid_spec=pltpu.PrefetchScalarGridSpec(
            num_scalar_prefetch=0,
            grid=grid,
            in_specs=[
                pl.BlockSpec((tb, in_pad), lambda i: (i, 0)),       # x tile
                pl.BlockSpec((w_rows, LANES), lambda i: (0, 0)),    # weights (resident)
                pl.BlockSpec((8, LANES), lambda i: (0, 0)),         # biases/LN (resident)
            ],
            out_specs=pl.BlockSpec((tb, LANES), lambda i: (i, 0)),
        ),
        compiler_params=pltpu.CompilerParams(
            dimension_semantics=("parallel",),        # v7x: both TCs split batch
            vmem_limit_bytes=32 * 1024 * 1024,        # portable to v7x 64 MiB VMEM
        ),
        cost_estimate=cost,
    )(x_p, w_slab, p_slab)

    return out_padded[:B, :n_actions]


# Jitted entry: fuses the host-side pad/cast and final slice with the call.
actor_forward_jit = jax.jit(actor_forward, static_argnames=("n_actions",))


def init_params(key, input_dim, n_actions):
    """Deterministic init mirroring the PyTorch module's __init__.

    bound = 1/sqrt(weight.size()[0]) = 1/sqrt(out_features) for fc1/fc2,
    0.003 for the policy head.  Weights stored transposed: (in, out).
    LayerNorm gamma=1, beta=0 (PyTorch default).
    """
    k = jax.random.split(key, 6)
    f1 = 1.0 / jnp.sqrt(32.0)
    f2 = 1.0 / jnp.sqrt(64.0)
    f3 = 0.003
    w1 = jax.random.uniform(k[0], (input_dim, H1), jnp.float32, -f1, f1)
    b1 = jax.random.uniform(k[1], (1, H1), jnp.float32, -f1, f1)
    g1 = jnp.ones((1, H1), jnp.float32)
    be1 = jnp.zeros((1, H1), jnp.float32)
    w2 = jax.random.uniform(k[2], (H1, H2), jnp.float32, -f2, f2)
    b2 = jax.random.uniform(k[3], (1, H2), jnp.float32, -f2, f2)
    g2 = jnp.ones((1, H2), jnp.float32)
    be2 = jnp.zeros((1, H2), jnp.float32)
    w3 = jax.random.uniform(k[4], (H2, n_actions), jnp.float32, -f3, f3)
    b3 = jax.random.uniform(k[5], (1, n_actions), jnp.float32, -f3, f3)
    return (w1, b1, g1, be1, w2, b2, g2, be2, w3, b3)


if __name__ == "__main__":
    key = jax.random.PRNGKey(0)
    kx, kp = jax.random.split(key)

    B, input_dim, n_actions = 8, 16, 4
    x = jax.random.normal(kx, (B, input_dim), jnp.float32)
    params = init_params(kp, input_dim, n_actions)
    w_slab, p_slab = pack_params(params)

    out = actor_forward_jit(x, w_slab, p_slab, n_actions=n_actions)
    out = jax.block_until_ready(out)
    assert out.shape == (B, n_actions)

    # Reference 1: pure-JAX with the SAME numerics as the kernel
    # (bf16 matmuls with f32 accumulation, full-lane layout, f32 LN/tanh).
    in_pad = w_slab.shape[0] - 2 * LANES
    xb = jnp.pad(x, ((0, 0), (0, in_pad - input_dim))).astype(jnp.bfloat16)
    h1 = jnp.dot(xb, w_slab[0:in_pad, :],
                 preferred_element_type=jnp.float32) + p_slab[0:1, :]
    h1 = _layernorm_1pass(h1, p_slab[1:2, :], p_slab[2:3, :], 1.0 / H1)
    h2 = jnp.dot(h1.astype(jnp.bfloat16), w_slab[in_pad:in_pad + LANES, :],
                 preferred_element_type=jnp.float32) + p_slab[3:4, :]
    h2 = jnp.maximum(
        _layernorm_1pass(h2, p_slab[4:5, :], p_slab[5:6, :], 1.0 / H2), 0.0)
    ref_bf16 = jnp.tanh(
        jnp.dot(h2.astype(jnp.bfloat16), w_slab[in_pad + LANES:, :],
                preferred_element_type=jnp.float32) + p_slab[6:7, :]
    )[:, :n_actions]
    assert jnp.allclose(out, ref_bf16, atol=2e-3, rtol=2e-3)

    # Reference 2: original full-f32 math (looser tolerance covers bf16 rounding).
    (w1, b1, g1, be1, w2, b2, g2, be2, w3, b3) = params
    h1f = _layernorm_1pass(x @ w1 + b1, g1, be1, 1.0 / H1)   # no relu (bug kept)
    h2f = jnp.maximum(_layernorm_1pass(h1f @ w2 + b2, g2, be2, 1.0 / H2), 0.0)
    ref_f32 = jnp.tanh(h2f @ w3 + b3)
    assert jnp.allclose(out, ref_f32, atol=3e-2, rtol=3e-2)

    print("KERNEL_OK")
</pallas_src>

<mosaic_0001>
module attributes {stable_mosaic.version = 11 : i64} {
  func.func @_actor_kernel(%arg0: i32, %arg1: memref<8x16xbf16, #tpu.memory_space<vmem>>, %arg2: memref<272x128xbf16, #tpu.memory_space<vmem>>, %arg3: memref<8x128xf32, #tpu.memory_space<vmem>>, %arg4: memref<8x128xf32, #tpu.memory_space<vmem>>) attributes {dimension_semantics = [#tpu.dimension_semantics<parallel>], iteration_bounds = array<i64: 1>, scalar_prefetch = 0 : i64, scratch_operands = 0 : i64, tpu.core_type = #tpu.core_type<tc>, window_params = [{transform_indices = @transform_0, window_bounds = array<i64: 8, 16>}, {pipeline_mode = #tpu.pipeline_mode<synchronous>, transform_indices = @transform_1, window_bounds = array<i64: 272, 128>}, {pipeline_mode = #tpu.pipeline_mode<synchronous>, transform_indices = @transform_2, window_bounds = array<i64: 8, 128>}, {transform_indices = @transform_3, window_bounds = array<i64: 8, 128>}]} {
    %c0 = arith.constant 0 : index
    %c0_0 = arith.constant 0 : index
    %0 = vector.load %arg1[%c0, %c0_0] : memref<8x16xbf16, #tpu.memory_space<vmem>>, vector<8x16xbf16>
    %c0_1 = arith.constant 0 : index
    %c0_2 = arith.constant 0 : index
    %1 = vector.load %arg2[%c0_1, %c0_2] : memref<272x128xbf16, #tpu.memory_space<vmem>>, vector<16x128xbf16>
    %cst = arith.constant dense<0.000000e+00> : vector<8x128xf32>
    %2 = tpu.matmul %0, %1, %cst {dimension_numbers = #tpu.dot_dimension_numbers<[1], [0], [0], [1], [0, 0, 1, 1], [], []>} : vector<8x16xbf16>, vector<16x128xbf16>, vector<8x128xf32> -> vector<8x128xf32>
    %c0_3 = arith.constant 0 : index
    %c0_4 = arith.constant 0 : index
    %3 = vector.load %arg3[%c0_3, %c0_4] : memref<8x128xf32, #tpu.memory_space<vmem>>, vector<1x128xf32>
    %4 = vector.broadcast %3 : vector<1x128xf32> to vector<8x128xf32>
    %5 = arith.addf %2, %4 : vector<8x128xf32>
    %c1 = arith.constant 1 : index
    %c0_5 = arith.constant 0 : index
    %6 = vector.load %arg3[%c1, %c0_5] : memref<8x128xf32, #tpu.memory_space<vmem>>, vector<1x128xf32>
    %c2 = arith.constant 2 : index
    %c0_6 = arith.constant 0 : index
    %7 = vector.load %arg3[%c2, %c0_6] : memref<8x128xf32, #tpu.memory_space<vmem>>, vector<1x128xf32>
    %cst_7 = arith.constant dense<0.000000e+00> : vector<8xf32>
    %8 = vector.multi_reduction <add>, %5, %cst_7 [1] : vector<8x128xf32> to vector<8xf32>
    %9 = vector.shape_cast %8 : vector<8xf32> to vector<8x1xf32>
    %10 = arith.mulf %5, %5 : vector<8x128xf32>
    %cst_8 = arith.constant dense<0.000000e+00> : vector<8xf32>
    %11 = vector.multi_reduction <add>, %10, %cst_8 [1] : vector<8x128xf32> to vector<8xf32>
    %12 = vector.shape_cast %11 : vector<8xf32> to vector<8x1xf32>
    %cst_9 = arith.constant 3.125000e-02 : f32
    %13 = vector.broadcast %cst_9 : f32 to vector<8x1xf32>
    %14 = arith.mulf %9, %13 : vector<8x1xf32>
    %cst_10 = arith.constant 3.125000e-02 : f32
    %15 = vector.broadcast %cst_10 : f32 to vector<8x1xf32>
    %16 = arith.mulf %12, %15 : vector<8x1xf32>
    %17 = arith.mulf %14, %14 : vector<8x1xf32>
    %18 = arith.subf %16, %17 : vector<8x1xf32>
    %19 = vector.broadcast %14 : vector<8x1xf32> to vector<8x128xf32>
    %20 = arith.subf %5, %19 : vector<8x128xf32>
    %cst_11 = arith.constant 9.99999974E-6 : f32
    %21 = vector.broadcast %cst_11 : f32 to vector<8x1xf32>
    %22 = arith.addf %18, %21 : vector<8x1xf32>
    %23 = math.rsqrt %22 : vector<8x1xf32>
    %24 = vector.broadcast %23 : vector<8x1xf32> to vector<8x128xf32>
    %25 = arith.mulf %20, %24 : vector<8x128xf32>
    %26 = vector.broadcast %6 : vector<1x128xf32> to vector<8x128xf32>
    %27 = arith.mulf %25, %26 : vector<8x128xf32>
    %28 = vector.broadcast %7 : vector<1x128xf32> to vector<8x128xf32>
    %29 = arith.addf %27, %28 : vector<8x128xf32>
    %30 = arith.truncf %29 : vector<8x128xf32> to vector<8x128xbf16>
    %c16 = arith.constant 16 : index
    %c0_12 = arith.constant 0 : index
    %31 = vector.load %arg2[%c16, %c0_12] : memref<272x128xbf16, #tpu.memory_space<vmem>>, vector<128x128xbf16>
    %cst_13 = arith.constant dense<0.000000e+00> : vector<8x128xf32>
    %32 = tpu.matmul %30, %31, %cst_13 {dimension_numbers = #tpu.dot_dimension_numbers<[1], [0], [0], [1], [0, 0, 1, 1], [], []>} : vector<8x128xbf16>, vector<128x128xbf16>, vector<8x128xf32> -> vector<8x128xf32>
    %c3 = arith.constant 3 : index
    %c0_14 = arith.constant 0 : index
    %33 = vector.load %arg3[%c3, %c0_14] : memref<8x128xf32, #tpu.memory_space<vmem>>, vector<1x128xf32>
    %34 = vector.broadcast %33 : vector<1x128xf32> to vector<8x128xf32>
    %35 = arith.addf %32, %34 : vector<8x128xf32>
    %c4 = arith.constant 4 : index
    %c0_15 = arith.constant 0 : index
    %36 = vector.load %arg3[%c4, %c0_15] : memref<8x128xf32, #tpu.memory_space<vmem>>, vector<1x128xf32>
    %c5 = arith.constant 5 : index
    %c0_16 = arith.constant 0 : index
    %37 = vector.load %arg3[%c5, %c0_16] : memref<8x128xf32, #tpu.memory_space<vmem>>, vector<1x128xf32>
    %cst_17 = arith.constant dense<0.000000e+00> : vector<8xf32>
    %38 = vector.multi_reduction <add>, %35, %cst_17 [1] : vector<8x128xf32> to vector<8xf32>
    %39 = vector.shape_cast %38 : vector<8xf32> to vector<8x1xf32>
    %40 = arith.mulf %35, %35 : vector<8x128xf32>
    %cst_18 = arith.constant dense<0.000000e+00> : vector<8xf32>
    %41 = vector.multi_reduction <add>, %40, %cst_18 [1] : vector<8x128xf32> to vector<8xf32>
    %42 = vector.shape_cast %41 : vector<8xf32> to vector<8x1xf32>
    %cst_19 = arith.constant 1.562500e-02 : f32
    %43 = vector.broadcast %cst_19 : f32 to vector<8x1xf32>
    %44 = arith.mulf %39, %43 : vector<8x1xf32>
    %cst_20 = arith.constant 1.562500e-02 : f32
    %45 = vector.broadcast %cst_20 : f32 to vector<8x1xf32>
    %46 = arith.mulf %42, %45 : vector<8x1xf32>
    %47 = arith.mulf %44, %44 : vector<8x1xf32>
    %48 = arith.subf %46, %47 : vector<8x1xf32>
    %49 = vector.broadcast %44 : vector<8x1xf32> to vector<8x128xf32>
    %50 = arith.subf %35, %49 : vector<8x128xf32>
    %cst_21 = arith.constant 9.99999974E-6 : f32
    %51 = vector.broadcast %cst_21 : f32 to vector<8x1xf32>
    %52 = arith.addf %48, %51 : vector<8x1xf32>
    %53 = math.rsqrt %52 : vector<8x1xf32>
    %54 = vector.broadcast %53 : vector<8x1xf32> to vector<8x128xf32>
    %55 = arith.mulf %50, %54 : vector<8x128xf32>
    %56 = vector.broadcast %36 : vector<1x128xf32> to vector<8x128xf32>
    %57 = arith.mulf %55, %56 : vector<8x128xf32>
    %58 = vector.broadcast %37 : vector<1x128xf32> to vector<8x128xf32>
    %59 = arith.addf %57, %58 : vector<8x128xf32>
    %cst_22 = arith.constant 0.000000e+00 : f32
    %60 = vector.broadcast %cst_22 : f32 to vector<8x128xf32>
    %61 = arith.maximumf %59, %60 : vector<8x128xf32>
    %62 = arith.truncf %61 : vector<8x128xf32> to vector<8x128xbf16>
    %c144 = arith.constant 144 : index
    %c0_23 = arith.constant 0 : index
    %63 = vector.load %arg2[%c144, %c0_23] : memref<272x128xbf16, #tpu.memory_space<vmem>>, vector<128x128xbf16>
    %cst_24 = arith.constant dense<0.000000e+00> : vector<8x128xf32>
    %64 = tpu.matmul %62, %63, %cst_24 {dimension_numbers = #tpu.dot_dimension_numbers<[1], [0], [0], [1], [0, 0, 1, 1], [], []>} : vector<8x128xbf16>, vector<128x128xbf16>, vector<8x128xf32> -> vector<8x128xf32>
    %c6 = arith.constant 6 : index
    %c0_25 = arith.constant 0 : index
    %65 = vector.load %arg3[%c6, %c0_25] : memref<8x128xf32, #tpu.memory_space<vmem>>, vector<1x128xf32>
    %66 = vector.broadcast %65 : vector<1x128xf32> to vector<8x128xf32>
    %67 = arith.addf %64, %66 : vector<8x128xf32>
    %68 = math.tanh %67 : vector<8x128xf32>
    %c0_26 = arith.constant 0 : index
    %c0_27 = arith.constant 0 : index
    %69 = vector.load %arg4[%c0_26, %c0_27] : memref<8x128xf32, #tpu.memory_space<vmem>>, vector<8x128xf32>
    tpu.vector_store %arg4[%c0_26, %c0_27], %68 {strides = array<i32>} : memref<8x128xf32, #tpu.memory_space<vmem>>, vector<8x128xf32>,
    return
  }
  func.func @transform_0(%arg0: i32) -> (i32, i32) {
    %c0_i32 = arith.constant 0 : i32
    %c0_i32_0 = arith.constant 0 : i32
    return %arg0, %c0_i32 : i32, i32
  }
  func.func @transform_1(%arg0: i32) -> (i32, i32) {
    %c0_i32 = arith.constant 0 : i32
    %c0_i32_0 = arith.constant 0 : i32
    %c0_i32_1 = arith.constant 0 : i32
    return %c0_i32, %c0_i32_0 : i32, i32
  }
  func.func @transform_2(%arg0: i32) -> (i32, i32) {
    %c0_i32 = arith.constant 0 : i32
    %c0_i32_0 = arith.constant 0 : i32
    %c0_i32_1 = arith.constant 0 : i32
    return %c0_i32, %c0_i32_0 : i32, i32
  }
  func.func @transform_3(%arg0: i32) -> (i32, i32) {
    %c0_i32 = arith.constant 0 : i32
    %c0_i32_0 = arith.constant 0 : i32
    return %arg0, %c0_i32 : i32, i32
  }
}

</mosaic_0001>

<bundles_post_ra>
// kernel: actor_forward.1
= control target key start
LH: loop header
LB: loop body
LE: loop exit
PB: predicated region body
PF: predicated region fallthrough
CT: control target
= control target key end

     0   :  { %8 = vsyncpa [#allocation3], 0  ;;  %s508_s12 = smov [#allocation2]   ;;  %s592_s0 = inlined_call_operand.vmem [shape: bf16[8,16], index: 0, kind: input, shape index: {}]   ;;  %s593_s1 = inlined_call_operand.hbm [shape: bf16[272,128], index: 1, kind: input, shape index: {}]   ;;  %s594_s2 = inlined_call_operand.vmem [shape: f32[8,128], index: 2, kind: input, shape index: {}]   ;;  %s595_s3 = inlined_call_operand.vmem [shape: f32[8,128], index: 3, kind: output, shape index: {}]  }
   0x1   :  { %s16_s13 = sshll.u32 %s508_s12, 4  ;;  %s484_s16 = scalar_lea.hbm %s593_s1, 2176  ;;  %s17_s13 = int_to_ptr.vmem [resolvable:$true] %s16_s13 }
   0x2   :  { %p485_p0 = scmp.ne.s32.totalorder %s593_s1, %s484_s16  ;;  %p488_p1 = scmp.lt.u32.totalorder %s484_s16, %s593_s1 }
   0x4   :  { %p490_p2 = pnand %p488_p1, %p485_p0 }
   0x6   :  { %493 = shalt.err (!%p490_p2)
}
   0x7   :  { %s494_s21 = scalar_lea.vmem %s17_s13, 2176  ;;  %p499_p4 = scmp.lt.s32.totalorder %s17_s13, %s17_s13 }
   0x8   :  { %p495_p3 = scmp.ne.s32.totalorder %s17_s13, %s494_s21  ;;  %p500_p5 = scmp.lt.s32.totalorder %s494_s21, %s494_s21 }
   0xa   :  { %p501_p6 = por %p500_p5, %p499_p4 }
   0xc   :  { %p502_p7 = pnand %p501_p6, %p495_p3 }
   0xe   :  { %505 = shalt.err (!%p502_p7)
}
   0xf   :  { %s509_s22 = smov 64   ;;  %s510_s23 = smov 4  }
  0x10   :  { %22 = dma.hbm_to_vmem [thread:$0]  %s593_s1, 2176, %s17_s13, [#allocation3], %s509_s22, %s509_s22, %s510_s23  }
  0x11   :  { %506 = dma.done.wait [#allocation3], 2176  }
  0x12   :  { %507 = vsyncadd [#allocation3], 4294965120  ;;  %v511_v0 = vmov 0.0   ;;  %vm512_vm0 = vmmov 0   ;;  %v461_v1 = vld [vmem:[#allocation2] sm:$0xff]   ;;  %vm43_vm1 = vcmask 130048  }
  0x13   :  { %410 = vmatprep.subr.bf16.mxu0 %v511_v0  ;;  %412 = vmatprep.mubr.msk.bf16.mxu0 %vm512_vm0, %v511_v0  ;;  %v29_v2 = vld [vmem:[%s592_s0] sm:$0xf]  ;;  %v462_v3 = vld [vmem:[#allocation2 + $0x8] sm:$0xff]   ;;  %v463_v11 = vld [vmem:[#allocation2 + $0x10] sm:$0xff]  }
  0x14   :  { %416 = vmatprep.subr.bf16.mxu1 %v511_v0  ;;  %432 = vmatprep.mubr.msk.bf16.mxu1 %vm512_vm0, %v511_v0  ;;  %v365_v4 = vld [vmem:[%s594_s2] ss:$0 sm:$0xff]  ;;  %v464_v12 = vld [vmem:[#allocation2 + $0x18] sm:$0xff]   ;;  %v466_v14 = vld [vmem:[#allocation2 + $0x28] sm:$0xff]  }
  0x15   :  { %411 = vmatpush3.bf16.msra.mxu0 %v461_v1  ;;  %417 = vmatpush3.bf16.msra.mxu1 %v462_v3  ;;  %v465_v13 = vld [vmem:[#allocation2 + $0x20] sm:$0xff]   ;;  %v467_v15 = vld [vmem:[#allocation2 + $0x30] sm:$0xff]   ;;  %v468_v16 = vld [vmem:[#allocation2 + $0x38] sm:$0xff]  }
  0x16   :  { %436 = vmatprep.subr.bf16.mxu0 %v511_v0  ;;  %418 = vmatprep.subr.bf16.mxu1 %v511_v0  ;;  %v469_v17 = vld [vmem:[#allocation2 + $0x40] sm:$0xff]   ;;  %v470_v40 = vld [vmem:[#allocation2 + $0x48] sm:$0xff]   ;;  %v471_v41 = vld [vmem:[#allocation2 + $0x50] sm:$0xff]  }
  0x17   :  { %v368_v27 = vld [vmem:[%s594_s2 + $0x1] ss:$0 sm:$0xff]  ;;  %v369_v29 = vld [vmem:[%s594_s2 + $0x2] ss:$0 sm:$0xff]  ;;  %v370_v33 = vld [vmem:[%s594_s2 + $0x3] ss:$0 sm:$0xff] }
  0x18   :  { %413 = vmatmul.mubr.msk.bf16.vlgmr.msra.gmra.mrb[0].mxu0 %vm43_vm1, %v29_v2  ;;  %v472_v42 = vld [vmem:[#allocation2 + $0x58] sm:$0xff]   ;;  %v473_v43 = vld [vmem:[#allocation2 + $0x60] sm:$0xff]   ;;  %v474_v44 = vld [vmem:[#allocation2 + $0x68] sm:$0xff]  }
  0x19   :  { %452 = vmatprep.mubr.msk.bf16.mxu0 %vm512_vm0, %v511_v0  ;;  %419 = vmatpush3.bf16.msra.mxu1 %v463_v11  ;;  %v475_v45 = vld [vmem:[#allocation2 + $0x70] sm:$0xff]   ;;  %v476_v46 = vld [vmem:[#allocation2 + $0x78] sm:$0xff]   ;;  %v477_v47 = vld [vmem:[#allocation2 + $0x80] sm:$0xff]  }
  0x1a   :  { %420 = vmatprep.subr.bf16.mxu1 %v511_v0  ;;  %437 = vmatpush3.bf16.msra.mxu0 %v470_v40  ;;  %v379_v57 = vld [vmem:[%s594_s2 + $0x4] ss:$0 sm:$0xff]  ;;  %v380_v59 = vld [vmem:[%s594_s2 + $0x5] ss:$0 sm:$0xff] }
  0x1b   :  { %438 = vmatprep.subr.bf16.mxu0 %v511_v0 }
  0x1d   :  { %421 = vmatpush3.bf16.msra.mxu1 %v464_v12 }
  0x1e   :  { %422 = vmatprep.subr.bf16.mxu1 %v511_v0  ;;  %439 = vmatpush3.bf16.msra.mxu0 %v471_v41 }
  0x1f   :  { %440 = vmatprep.subr.bf16.mxu0 %v511_v0 }
  0x21   :  { %423 = vmatpush3.bf16.msra.mxu1 %v465_v13 }
  0x22   :  { %424 = vmatprep.subr.bf16.mxu1 %v511_v0  ;;  %441 = vmatpush3.bf16.msra.mxu0 %v472_v42 }
  0x23   :  { %442 = vmatprep.subr.bf16.mxu0 %v511_v0 }
  0x25   :  { %425 = vmatpush3.bf16.msra.mxu1 %v466_v14 }
  0x26   :  { %426 = vmatprep.subr.bf16.mxu1 %v511_v0  ;;  %443 = vmatpush3.bf16.msra.mxu0 %v473_v43 }
  0x27   :  { %444 = vmatprep.subr.bf16.mxu0 %v511_v0 }
  0x29   :  { %427 = vmatpush3.bf16.msra.mxu1 %v467_v15 }
  0x2a   :  { %428 = vmatprep.subr.bf16.mxu1 %v511_v0  ;;  %445 = vmatpush3.bf16.msra.mxu0 %v474_v44 }
  0x2b   :  { %446 = vmatprep.subr.bf16.mxu0 %v511_v0 }
  0x2d   :  { %429 = vmatpush3.bf16.msra.mxu1 %v468_v16 }
  0x2e   :  { %430 = vmatprep.subr.bf16.mxu1 %v511_v0  ;;  %447 = vmatpush3.bf16.msra.mxu0 %v475_v45 }
  0x2f   :  { %448 = vmatprep.subr.bf16.mxu0 %v511_v0 }
  0x31   :  { %431 = vmatpush3.bf16.msra.mxu1 %v469_v17 }
  0x32   :  { %449 = vmatpush3.bf16.msra.mxu0 %v476_v46 }
  0x33   :  { %450 = vmatprep.subr.bf16.mxu0 %v511_v0  ;;  %v381_v0 = vld [vmem:[%s594_s2 + $0x6] ss:$0 sm:$0xff] }
  0x36   :  { %451 = vmatpush3.bf16.msra.mxu0 %v477_v47 }
  0xeb   :  { %v81_v5 = vpop.f32.mrb[0].mxu0 }
  0xec   :  { %v82_v6 = vadd.f32 %v365_v4, %v81_v5  ;;  %v414_v7 = vpop.f32.mrb[1].mxu0 }
  0xed   :  { %v84_v8 = vpop.f32.mrb[2].mxu0 }
  0xee   :  { %89 = vadd.xlane.f32.xlu0 %v82_v6  ;;  %v415_v9 = vpop.f32.mrb[3].mxu0  ;;  %v91_v10 = vmul.f32 %v82_v6, %v82_v6 }
  0xf2   :  { %92 = vadd.xlane.f32.xlu0 %v91_v10 }
 0x17b   :  { %v90_v18 = vpop.xlane.xlu0 %89 }
 0x17c   :  { %v94_v19 = vmul.f32 0.03125, %v90_v18 }
 0x17e   :  { %v96_v21 = vmul.f32 %v94_v19, %v94_v19  ;;  %v98_v25 = vsub.f32 %v82_v6, %v94_v19 }
 0x17f   :  { %v93_v20 = vpop.xlane.xlu0 %92 }
 0x180   :  { %v95_v22 = vmul.f32 0.03125, %v93_v20 }
 0x182   :  { %v97_v23 = vsub.f32 %v95_v22, %v96_v21 }
 0x184   :  { %v99_v24 = vadd.f32 1e-05, %v97_v23 }
 0x186   :  { %478 = vrsqrt.f32 %v99_v24 }
 0x190   :  { %v479_v26 = vpop.eup %478 }
 0x191   :  { %v101_v28 = vmul.f32 %v479_v26, %v98_v25 }
 0x193   :  { %v106_v30 = vmul.f32 %v368_v27, %v101_v28 }
 0x195   :  { %v111_v31 = vadd.f32 %v369_v29, %v106_v30 }
 0x197   :  { %v112_v32 = vpack.c.bf16 %v111_v31, %v111_v31 }
 0x199   :  { %433 = vmatmul.mubr.bf16.vlgmr.msra.gmra.mrb[0].mxu1 %v112_v32 }
 0x26c   :  { %v216_v34 = vpop.f32.mrb[0].mxu1 }
 0x26d   :  { %v217_v35 = vadd.f32 %v370_v33, %v216_v34  ;;  %v434_v36 = vpop.f32.mrb[1].mxu1 }
 0x26e   :  { %v219_v37 = vpop.f32.mrb[2].mxu1 }
 0x26f   :  { %224 = vadd.xlane.f32.xlu1 %v217_v35  ;;  %v435_v38 = vpop.f32.mrb[3].mxu1  ;;  %v226_v39 = vmul.f32 %v217_v35, %v217_v35 }
 0x273   :  { %227 = vadd.xlane.f32.xlu1 %v226_v39 }
 0x2fc   :  { %v225_v48 = vpop.xlane.xlu1 %224 }
 0x2fd   :  { %v229_v49 = vmul.f32 0.015625, %v225_v48 }
 0x2ff   :  { %v231_v51 = vmul.f32 %v229_v49, %v229_v49  ;;  %v233_v55 = vsub.f32 %v217_v35, %v229_v49 }
 0x300   :  { %v228_v50 = vpop.xlane.xlu1 %227 }
 0x301   :  { %v230_v52 = vmul.f32 0.015625, %v228_v50 }
 0x303   :  { %v232_v53 = vsub.f32 %v230_v52, %v231_v51 }
 0x305   :  { %v234_v54 = vadd.f32 1e-05, %v232_v53 }
 0x307   :  { %480 = vrsqrt.f32 %v234_v54 }
 0x311   :  { %v481_v56 = vpop.eup %480 }
 0x312   :  { %v236_v58 = vmul.f32 %v481_v56, %v233_v55 }
 0x314   :  { %v241_v60 = vmul.f32 %v379_v57, %v236_v58 }
 0x316   :  { %v246_v61 = vadd.f32 %v380_v59, %v241_v60 }
 0x318   :  { %v247_v62 = vmax.f32 %v246_v61, 0.0 }
 0x31a   :  { %v248_v63 = vpack.c.bf16 %v247_v62, %v247_v62 }
 0x31c   :  { %453 = vmatmul.mubr.bf16.vlgmr.msra.gmra.mrb[4].mxu0 %v248_v63 }
 0x3ef   :  { %v352_v1 = vpop.f32.mrb[4].mxu0 }
 0x3f0   :  { %v353_v2 = vadd.f32 %v381_v0, %v352_v1  ;;  %v454_v3 = vpop.f32.mrb[5].mxu0 }
 0x3f1   :  { %v355_v4 = vpop.f32.mrb[6].mxu0 }
 0x3f2   :  { %482 = vtanh.f32 %v353_v2  ;;  %v455_v5 = vpop.f32.mrb[7].mxu0 }
 0x3fc   :  { %v483_v6 = vpop.eup %482 }
 0x3fd   :  { %359 = vst [vmem:[%s595_s3] sm:$0xff] %v483_v6 }
 0x3fe   :  { %364 = vsyncpa [#allocation3], 1 }

</bundles_post_ra>
